<compile_context>
chip_gen: v7x
topology: tpu7x:2x2x1
jax: 0.10.0
libtpu: 0.0.40
codegen_flags: <defaults>
</compile_context>

<pallas_src>
import jax
import jax.numpy as jnp
from jax.experimental import pallas as pl
from jax.experimental.pallas import tpu as pltpu


def _make_tanh_kernel(A: float, S: float):
    A = float(A)
    S = float(S)

    def kernel(x_ref, o_ref):
        # Upcast to f32 for the transcendental (no-op for f32 inputs),
        # downcast on store. A/S are immediates — no SMEM loads/broadcasts.
        xf = x_ref[...].astype(jnp.float32)
        y = jnp.float32(A) * jnp.tanh(jnp.float32(S) * xf)
        o_ref[...] = y.astype(o_ref.dtype)

    return kernel


def _choose_layout(n: int, sublane: int):
    """Pick a lane-dense (rows, lanes) layout, avoiding padding when possible."""
    for lanes in (1024, 512, 256, 128):
        if n % lanes == 0 and (n // lanes) % sublane == 0:
            return lanes, n // lanes, False
    # Fallback: pad the tail (only when shape isn't nicely divisible).
    lanes = 512
    rows = pl.cdiv(n, lanes)
    rows = -(-rows // sublane) * sublane
    return lanes, rows, True


def scaled_tanh(x: jax.Array, A: float = 1.716, S: float = 2.0 / 3.0) -> jax.Array:
    """A * tanh(S * x), elementwise, same shape/dtype as x."""
    orig_shape = x.shape
    dtype = x.dtype
    n = x.size
    itemsize = dtype.itemsize
    # Sublane granularity: 8 for 32-bit, 16 for bf16/f16, 32 for 8-bit dtypes.
    sublane = max(8, 32 // itemsize)

    lanes, rows, needs_pad = _choose_layout(n, sublane)

    x_flat = jnp.ravel(x)
    if needs_pad:
        x_flat = jnp.pad(x_flat, (0, rows * lanes - n))
    x2d = x_flat.reshape(rows, lanes)

    # ~1 MiB per buffer -> (2 bufs in + 2 bufs out) ~ 4 MiB pipelined footprint,
    # fits comfortably within default scoped VMEM on v5e/v6e/v7x.
    target_block_bytes = 1 << 20
    block_rows = (target_block_bytes // (lanes * itemsize)) // sublane * sublane
    block_rows = max(sublane, min(rows, block_rows))
    grid = (pl.cdiv(rows, block_rows),)

    out2d = pl.pallas_call(
        _make_tanh_kernel(A, S),
        out_shape=jax.ShapeDtypeStruct((rows, lanes), dtype),
        grid_spec=pl.GridSpec(
            grid=grid,
            in_specs=[pl.BlockSpec((block_rows, lanes), lambda i: (i, 0))],
            out_specs=pl.BlockSpec((block_rows, lanes), lambda i: (i, 0)),
        ),
        compiler_params=pltpu.CompilerParams(
            dimension_semantics=("parallel",),
        ),
        cost_estimate=pl.CostEstimate(
            flops=2 * n,
            transcendentals=n,
            bytes_accessed=2 * n * itemsize,
        ),
    )(x2d)

    if needs_pad:
        return out2d.reshape(-1)[:n].reshape(orig_shape)
    return out2d.reshape(orig_shape)


if __name__ == "__main__":
    key = jax.random.PRNGKey(0)
    # Small NCHW input consistent with the conv-net module this Tanh lives in.
    x = jax.random.normal(key, (2, 4, 16, 16), dtype=jnp.float32)

    out = scaled_tanh(x)
    jax.block_until_ready(out)

    # Reference check in plain JAX (same f32 constants as the torch buffers).
    ref = jnp.float32(1.716) * jnp.tanh(jnp.float32(2.0 / 3.0) * x)
    assert out.shape == x.shape and out.dtype == x.dtype
    assert jnp.allclose(out, ref, atol=1e-6, rtol=1e-6)

    print("KERNEL_OK")
</pallas_src>

<mosaic_0001>
module attributes {stable_mosaic.version = 11 : i64} {
  func.func @kernel(%arg0: i32, %arg1: memref<8x256xf32, #tpu.memory_space<vmem>>, %arg2: memref<8x256xf32, #tpu.memory_space<vmem>>) attributes {dimension_semantics = [#tpu.dimension_semantics<parallel>], iteration_bounds = array<i64: 1>, scalar_prefetch = 0 : i64, scratch_operands = 0 : i64, tpu.core_type = #tpu.core_type<tc>, window_params = [{transform_indices = @transform_0, window_bounds = array<i64: 8, 256>}, {transform_indices = @transform_1, window_bounds = array<i64: 8, 256>}]} {
    %c0 = arith.constant 0 : index
    %c0_0 = arith.constant 0 : index
    %0 = vector.load %arg1[%c0, %c0_0] : memref<8x256xf32, #tpu.memory_space<vmem>>, vector<8x256xf32>
    %cst = arith.constant 0.666666686 : f32
    %1 = vector.broadcast %cst : f32 to vector<8x256xf32>
    %2 = arith.mulf %1, %0 : vector<8x256xf32>
    %3 = math.tanh %2 : vector<8x256xf32>
    %cst_1 = arith.constant 1.716000e+00 : f32
    %4 = vector.broadcast %cst_1 : f32 to vector<8x256xf32>
    %5 = arith.mulf %4, %3 : vector<8x256xf32>
    %c0_2 = arith.constant 0 : index
    %c0_3 = arith.constant 0 : index
    %6 = vector.load %arg2[%c0_2, %c0_3] : memref<8x256xf32, #tpu.memory_space<vmem>>, vector<8x256xf32>
    tpu.vector_store %arg2[%c0_2, %c0_3], %5 {strides = array<i32>} : memref<8x256xf32, #tpu.memory_space<vmem>>, vector<8x256xf32>,
    return
  }
  func.func @transform_0(%arg0: i32) -> (i32, i32) {
    %c0_i32 = arith.constant 0 : i32
    %c0_i32_0 = arith.constant 0 : i32
    return %arg0, %c0_i32 : i32, i32
  }
  func.func @transform_1(%arg0: i32) -> (i32, i32) {
    %c0_i32 = arith.constant 0 : i32
    %c0_i32_0 = arith.constant 0 : i32
    return %arg0, %c0_i32 : i32, i32
  }
}

</mosaic_0001>

<bundles_post_ra>
// kernel: tpu_custom_call.1
= control target key start
LH: loop header
LB: loop body
LE: loop exit
PB: predicated region body
PF: predicated region fallthrough
CT: control target
= control target key end

     0   :  { %6 = vsyncpa [#allocation3], 0  ;;  %s136_s0 = inlined_call_operand.hbm [shape: f32[8,256], index: 0, kind: input, shape index: {}]   ;;  %s137_s1 = inlined_call_operand.hbm [shape: f32[8,256], index: 1, kind: output, shape index: {}]  }
   0x1   :  { %7 = vsyncpa [#allocation4], 0  ;;  %s100_s6 = smov [#allocation2]   ;;  %s52_s10 = scalar_lea.hbm %s136_s0, 256 }
   0x2   :  { %s14_s7 = sshll.u32 %s100_s6, 4  ;;  %p53_p0 = scmp.ne.s32.totalorder %s136_s0, %s52_s10  ;;  %s15_s7 = int_to_ptr.vmem [resolvable:$true] %s14_s7 }
   0x3   :  { %p56_p1 = scmp.lt.u32.totalorder %s52_s10, %s136_s0 }
   0x5   :  { %p58_p2 = pnand %p56_p1, %p53_p0 }
   0x7   :  { %61 = shalt.err (!%p58_p2)
}
   0x8   :  { %s62_s15 = scalar_lea.vmem %s15_s7, 256  ;;  %p67_p4 = scmp.lt.s32.totalorder %s15_s7, %s15_s7 }
   0x9   :  { %p63_p3 = scmp.ne.s32.totalorder %s15_s7, %s62_s15  ;;  %p68_p5 = scmp.lt.s32.totalorder %s62_s15, %s62_s15 }
   0xb   :  { %p69_p6 = por %p68_p5, %p67_p4 }
   0xd   :  { %p70_p7 = pnand %p69_p6, %p63_p3 }
   0xf   :  { %73 = shalt.err (!%p70_p7)
}
  0x10   :  { %17 = dma.hbm_to_vmem [thread:$0]  %s136_s0, 256, %s15_s7, [#allocation3]  }
  0x11   :  { %96 = dma.done.wait [#allocation3], 256  }
  0x12   :  { %97 = vsyncadd [#allocation3], 4294967040  ;;  %v21_v0 = vld [vmem:[#allocation2] sm:$0xff]  ;;  %v22_v1 = vld [vmem:[#allocation2 + $0x8] sm:$0xff]  ;;  %s101_s18 = smov [#allocation5]  }
  0x13   :  { %v23_v2 = vmul.f32 0.6666667, %v21_v0  ;;  %v24_v3 = vmul.f32 0.6666667, %v22_v1  ;;  %s37_s19 = sshll.u32 %s101_s18, 4  ;;  %s38_s19 = int_to_ptr.vmem [resolvable:$true] %s37_s19 }
  0x14   :  { %s74_s20 = scalar_lea.vmem %s38_s19, 256  ;;  %p79_p9 = scmp.lt.s32.totalorder %s38_s19, %s38_s19 }
  0x15   :  { %48 = vtanh.f32 %v23_v2  ;;  %p75_p8 = scmp.ne.s32.totalorder %s38_s19, %s74_s20  ;;  %p80_p10 = scmp.lt.s32.totalorder %s74_s20, %s74_s20 }
  0x16   :  { %50 = vtanh.f32 %v24_v3 }
  0x17   :  { %p81_p11 = por %p80_p10, %p79_p9 }
  0x19   :  { %p82_p12 = pnand %p81_p11, %p75_p8 }
  0x1f   :  { %v49_v4 = vpop.eup %48 }
  0x20   :  { %v51_v5 = vpop.eup %50  ;;  %v27_v6 = vmul.f32 1.716, %v49_v4 }
  0x21   :  { %v28_v7 = vmul.f32 1.716, %v51_v5 }
  0x22   :  { %29 = vst [vmem:[#allocation5] sm:$0xff] %v27_v6 }
  0x23   :  { %30 = vst [vmem:[#allocation5 + $0x8] sm:$0xff] %v28_v7 }
  0x24   :  { %85 = shalt.err (!%p82_p12)
}
  0x25   :  { %s86_s22 = scalar_lea.hbm %s137_s1, 256 }
  0x26   :  { %p87_p13 = scmp.ne.s32.totalorder %s137_s1, %s86_s22  ;;  %p90_p0 = scmp.lt.u32.totalorder %s86_s22, %s137_s1 }
  0x28   :  { %p92_p1 = pnand %p90_p0, %p87_p13 }
  0x2a   :  { %95 = shalt.err (!%p92_p1)
}
  0x2b   :  { %40 = dma.vmem_to_hbm [thread:$0]  %s38_s19, 256, %s137_s1, [#allocation4]  }
  0x2c   :  { %98 = dma.done.wait [#allocation4], 256  }
  0x2d   :  { %99 = vsyncadd [#allocation4], 4294967040 }
  0x2e   :  { %44 = vsyncpa [#allocation3], 1 }
  0x2f   :  { %45 = vsyncpa [#allocation4], 1 }

</bundles_post_ra>
